<compile_context>
chip_gen: v7x
topology: tpu7x:2x2x1
jax: 0.10.0
libtpu: 0.0.40
codegen_flags: <defaults>
</compile_context>

<pallas_src>
import math
from functools import partial

import jax
import jax.numpy as jnp
from jax.experimental import pallas as pl
from jax.experimental.pallas import tpu as pltpu


# ----------------------------------------------------------------------------
# Pallas kernels
# ----------------------------------------------------------------------------
def _conv_kernel(*refs, offsets, act, has_res, m_rows):
    """Fused conv: tap-accumulated matmul + bias + activation (+ residual).

    refs (in order): x (L,Cin) bf16, w (KK,Cin,Cout) bf16, b (1,Cout) f32,
                     [alpha (1,) f32 SMEM], [res (m_rows,Cout) f32],
                     out (m_rows,Cout) f32
    """
    it = iter(refs)
    x_ref = next(it)
    w_ref = next(it)
    b_ref = next(it)
    alpha_ref = next(it) if act == "prelu" else None
    res_ref = next(it) if has_res else None
    o_ref = next(it)

    cout = o_ref.shape[-1]
    acc = jnp.zeros((m_rows, cout), jnp.float32)
    for t, off in enumerate(offsets):
        xs = x_ref[pl.ds(off, m_rows), :]                 # (m_rows, Cin) bf16
        acc = acc + jnp.dot(xs, w_ref[t],
                            preferred_element_type=jnp.float32)
    acc = acc + b_ref[...]                                # (1, Cout) broadcast
    if act == "relu":
        acc = jnp.maximum(acc, 0.0)
    elif act == "prelu":
        a = alpha_ref[0]
        acc = jnp.where(acc >= 0.0, acc, a * acc)
    if has_res:
        acc = acc + res_ref[...]
    o_ref[...] = acc.astype(o_ref.dtype)


def _max4_kernel(a_ref, b_ref, c_ref, d_ref, o_ref):
    o_ref[...] = jnp.maximum(jnp.maximum(a_ref[...], b_ref[...]),
                             jnp.maximum(c_ref[...], d_ref[...]))


def _add_kernel(a_ref, b_ref, o_ref):
    o_ref[...] = a_ref[...] + b_ref[...]


# ----------------------------------------------------------------------------
# Conv wrapper (traced inside jitted block functions)
# ----------------------------------------------------------------------------
def conv2d(x, p, *, padding=0, stride=1, act="none", alpha=None, residual=None):
    """x: (N,H,W,Cin) f32 NHWC.  p["w"]: (k*k,Cin,Cout) bf16, p["b"]: (1,Cout) f32."""
    w3, b = p["w"], p["b"]
    kk, cin, cout = w3.shape
    k = int(round(math.sqrt(kk)))
    n, h, wd, _ = x.shape

    if k == 1:
        hp, wp = h, wd
        x_r = x
        offsets = (0,)
    else:
        x_r = jnp.pad(x, ((0, 0), (padding, padding), (padding, padding), (0, 0)))
        hp, wp = h + 2 * padding, wd + 2 * padding
        offsets = tuple(di * wp + dj for di in range(k) for dj in range(k))

    ho, wo = hp - k + 1, wp - k + 1
    m_out = ho * wp                                   # full-width raster rows
    m_rows = ((max(m_out, 8) + 7) // 8) * 8           # >=8, multiple of 8
    l_need = max(hp * wp, offsets[-1] + m_rows)       # no in-kernel OOB reads
    l_in = ((l_need + 7) // 8) * 8

    x_flat = x_r.reshape(n, hp * wp, cin)
    if l_in > hp * wp:
        x_flat = jnp.pad(x_flat, ((0, 0), (0, l_in - hp * wp), (0, 0)))
    x_flat = x_flat.astype(jnp.bfloat16).reshape(n * l_in, cin)

    has_res = residual is not None
    args = [x_flat, w3, b]
    in_specs = [
        pl.BlockSpec((l_in, cin), lambda i: (i, 0)),
        pl.BlockSpec((kk, cin, cout), lambda i: (0, 0, 0)),
        pl.BlockSpec((1, cout), lambda i: (0, 0)),
    ]
    if act == "prelu":
        args.append(alpha)                                    # (1,) f32
        in_specs.append(pl.BlockSpec(memory_space=pltpu.MemorySpace.SMEM))
    if has_res:
        assert k == 1 and stride == 1 and residual.shape[-1] == cout
        res_flat = residual.reshape(n, m_out, cout)
        if m_rows > m_out:
            res_flat = jnp.pad(res_flat, ((0, 0), (0, m_rows - m_out), (0, 0)))
        args.append(res_flat.reshape(n * m_rows, cout))
        in_specs.append(pl.BlockSpec((m_rows, cout), lambda i: (i, 0)))

    y = pl.pallas_call(
        partial(_conv_kernel, offsets=offsets, act=act,
                has_res=has_res, m_rows=m_rows),
        out_shape=jax.ShapeDtypeStruct((n * m_rows, cout), jnp.float32),
        grid=(n,),
        in_specs=in_specs,
        out_specs=pl.BlockSpec((m_rows, cout), lambda i: (i, 0)),
        compiler_params=pltpu.CompilerParams(
            dimension_semantics=("parallel",)),
    )(*args)

    y = y.reshape(n, m_rows, cout)[:, :m_out, :]
    y = y.reshape(n, ho, wp, cout)[:, :, :wo, :]      # crop garbage columns
    if stride != 1:
        y = y[:, ::stride, ::stride, :]
    return y


def pixel_shuffle(x, r):
    """PyTorch PixelShuffle semantics on NHWC activations."""
    n, h, w, c = x.shape
    c_out = c // (r * r)
    x = x.reshape(n, h, w, c_out, r, r)
    x = jnp.transpose(x, (0, 1, 4, 2, 5, 3))          # N, H, r, W, r, C
    return x.reshape(n, h * r, w * r, c_out)


# ----------------------------------------------------------------------------
# Jitted block-level functions (glue fuses in XLA, conv compute in Pallas)
# ----------------------------------------------------------------------------
@partial(jax.jit, static_argnames=("stride", "padding", "act"))
def _jit_conv(x, p, *, stride, padding, act):
    return conv2d(x, p, padding=padding, stride=stride, act=act)


@jax.jit
def _jit_residual_block(x, p):
    r = conv2d(x, p["conv1"], padding=1, act="prelu", alpha=p["alpha"])
    r = conv2d(r, p["conv2"], padding=1, act="none")
    return x + r            # crop + residual add fused by XLA inside this jit


@jax.jit
def _jit_bottleneck(x, p):
    t = jnp.maximum(x, 0.0)                                    # pre-ReLU (fused)
    t = conv2d(t, p["conv1"], padding=0, act="relu")           # 1x1
    t = conv2d(t, p["conv2"], padding=1, act="relu")           # 3x3
    return conv2d(t, p["conv3"], padding=0, act="none", residual=x)  # 1x1 + add


@partial(jax.jit, static_argnames=("r",))
def _jit_upsample_block(x, conv_p, alpha, *, r):
    # PReLU (single shared alpha) commutes with PixelShuffle -> fuse into conv.
    y = conv2d(x, conv_p, padding=1, act="prelu", alpha=alpha)
    return pixel_shuffle(y, r)


@jax.jit
def _jit_pool(x):
    """F.max_pool2d(x, 2, stride=2) on NHWC; reduction done in Pallas."""
    n, h, w, c = x.shape
    a = x[:, 0::2, 0::2, :].reshape(-1, c)
    b = x[:, 0::2, 1::2, :].reshape(-1, c)
    cc = x[:, 1::2, 0::2, :].reshape(-1, c)
    d = x[:, 1::2, 1::2, :].reshape(-1, c)
    out = pl.pallas_call(
        _max4_kernel, out_shape=jax.ShapeDtypeStruct(a.shape, x.dtype))(a, b, cc, d)
    return out.reshape(n, h // 2, w // 2, c)


@jax.jit
def _jit_up_add(up1, low3):
    """Hourglass merge: up1 + nearest_upsample_x2(low3)."""
    up2 = jnp.repeat(jnp.repeat(low3, 2, axis=1), 2, axis=2)
    n, h, w, c = up1.shape
    out = pl.pallas_call(
        _add_kernel, out_shape=jax.ShapeDtypeStruct((n * h * w, c), up1.dtype)
    )(up1.reshape(-1, c), up2.reshape(-1, c))
    return out.reshape(up1.shape)


# ----------------------------------------------------------------------------
# Deterministic parameter construction (shapes mirror the PyTorch module)
# ----------------------------------------------------------------------------
class ParamGen:
    def __init__(self, key):
        self._key = key

    def _next(self):
        self._key, sub = jax.random.split(self._key)
        return sub

    def conv(self, cin, cout, k):
        fan_in = cin * k * k
        w = jax.random.normal(self._next(), (k, k, cin, cout), jnp.float32) \
            * (1.0 / math.sqrt(fan_in))
        b = (jax.random.uniform(self._next(), (cout,), jnp.float32) - 0.5) \
            * (2.0 / math.sqrt(fan_in))
        return {"w": w.reshape(k * k, cin, cout).astype(jnp.bfloat16),
                "b": b.reshape(1, cout)}

    def prelu(self):
        return jnp.full((1,), 0.25, jnp.float32)      # nn.PReLU() default init


def make_residual_block(pg, ch):
    return {"conv1": pg.conv(ch, ch, 3), "alpha": pg.prelu(),
            "conv2": pg.conv(ch, ch, 3)}


def make_bottleneck(pg, inplanes, planes):
    return {"conv1": pg.conv(inplanes, planes, 1),
            "conv2": pg.conv(planes, planes, 3),
            "conv3": pg.conv(planes, planes * 2, 1)}


def make_residual_seq(pg, planes, num_blocks):
    return [make_bottleneck(pg, planes * 2, planes) for _ in range(num_blocks)]


def make_hourglass(pg, num_blocks, planes, depth):
    hg = []
    for i in range(depth):
        res = [make_residual_seq(pg, planes, num_blocks) for _ in range(3)]
        if i == 0:
            res.append(make_residual_seq(pg, planes, num_blocks))
        hg.append(res)
    return hg


def make_upsample_block(pg, cin, r):
    return {"conv": pg.conv(cin, cin * r * r, 3), "alpha": pg.prelu(), "r": r}


def build_generator_params(pg, scale_factor, nums_residuals=20):
    n_up = int(math.log(scale_factor, 2))
    return {
        "block1": {"conv": pg.conv(3, 64, 3)},
        "block2": [make_residual_block(pg, 64) for _ in range(nums_residuals)],
        "block3_up": make_upsample_block(pg, 64, 4),
        "block3_conv": pg.conv(64, 3, 3),
        "block4": {"conv": pg.conv(3, 64, 3)},
        "block5": [make_residual_block(pg, 64) for _ in range(3)],
        "hg1": make_hourglass(pg, 3, 64 // 2, 4),
        "hg2": make_hourglass(pg, 3, 64 // 2, 4),
        "block6": [make_residual_block(pg, 64) for _ in range(3)],
        "block7_up": [make_upsample_block(pg, 64, 2) for _ in range(n_up)],
        "block7_conv": pg.conv(64, 3, 3),
    }


# ----------------------------------------------------------------------------
# Forward pass (NHWC internally)
# ----------------------------------------------------------------------------
def residual_seq_fwd(x, ps):
    for p in ps:
        x = _jit_bottleneck(x, p)
    return x


def hourglass_fwd(x, hg, depth):
    def rec(n, x):
        up1 = residual_seq_fwd(x, hg[n - 1][0])
        low1 = _jit_pool(x)
        low1 = residual_seq_fwd(low1, hg[n - 1][1])
        if n > 1:
            low2 = rec(n - 1, low1)
        else:
            low2 = residual_seq_fwd(low1, hg[0][3])
        low3 = residual_seq_fwd(low2, hg[n - 1][2])
        return _jit_up_add(up1, low3)
    return rec(depth, x)


def generator_forward(x_nchw, params):
    x = jnp.transpose(x_nchw, (0, 2, 3, 1)).astype(jnp.float32)   # NCHW -> NHWC

    x = _jit_conv(x, params["block1"]["conv"], stride=1, padding=1, act="relu")
    for p in params["block2"]:
        x = _jit_residual_block(x, p)
    b3 = params["block3_up"]
    x = _jit_upsample_block(x, b3["conv"], b3["alpha"], r=b3["r"])
    x = _jit_conv(x, params["block3_conv"], stride=1, padding=1, act="none")
    mid_x = x
    x = _jit_conv(x, params["block4"]["conv"], stride=2, padding=1, act="relu")
    for p in params["block5"]:
        x = _jit_residual_block(x, p)
    x = hourglass_fwd(x, params["hg1"], 4)
    x = hourglass_fwd(x, params["hg2"], 4)
    for p in params["block6"]:
        x = _jit_residual_block(x, p)
    for p in params["block7_up"]:
        x = _jit_upsample_block(x, p["conv"], p["alpha"], r=p["r"])
    x = _jit_conv(x, params["block7_conv"], stride=2, padding=1, act="none")

    return (jnp.transpose(mid_x, (0, 3, 1, 2)),
            jnp.transpose(x, (0, 3, 1, 2)))


# ----------------------------------------------------------------------------
# Self-check of the fused conv kernel against lax.conv (same bf16 operands)
# ----------------------------------------------------------------------------
def _ref_conv(x, p, padding, stride, act, alpha, residual):
    w = p["w"].astype(jnp.float32)
    kk, cin, cout = w.shape
    k = int(round(math.sqrt(kk)))
    w4 = w.reshape(k, k, cin, cout)
    xb = x.astype(jnp.bfloat16).astype(jnp.float32)
    y = jax.lax.conv_general_dilated(
        xb, w4, (stride, stride), [(padding, padding), (padding, padding)],
        dimension_numbers=("NHWC", "HWIO", "NHWC"),
        precision=jax.lax.Precision.HIGHEST)
    y = y + p["b"].reshape(1, 1, 1, cout)
    if act == "relu":
        y = jnp.maximum(y, 0.0)
    elif act == "prelu":
        y = jnp.where(y >= 0.0, y, alpha.reshape(()) * y)
    if residual is not None:
        y = y + residual
    return y


# ----------------------------------------------------------------------------
if __name__ == "__main__":
    root = jax.random.PRNGKey(0)
    pkey, xkey = jax.random.split(root)

    # Quick correctness check of the Pallas conv kernel.
    tpg = ParamGen(jax.random.PRNGKey(42))
    xt = jax.random.normal(jax.random.PRNGKey(1), (2, 8, 8, 16), jnp.float32)
    for (cin, cout, k, pad, stride, act) in [(16, 32, 3, 1, 1, "relu"),
                                             (16, 32, 3, 1, 1, "prelu"),
                                             (16, 32, 3, 1, 2, "none"),
                                             (16, 16, 1, 0, 1, "none")]:
        p = tpg.conv(cin, cout, k)
        al = tpg.prelu()
        res = xt if (k == 1 and cin == cout) else None
        got = conv2d(xt, p, padding=pad, stride=stride, act=act,
                     alpha=al, residual=res)
        want = _ref_conv(xt, p, pad, stride, act, al, res)
        err = float(jnp.max(jnp.abs(got - want)))
        assert err < 1e-2, (k, act, stride, err)

    scale_factor = 2
    params = build_generator_params(ParamGen(pkey), scale_factor=scale_factor,
                                    nums_residuals=20)

    # Input: NCHW, batch=2, 3 channels, 8x8 spatial
    # (8x8 -> block3 upsamples x4 -> 32x32, block4 stride-2 -> 16x16, which is
    #  divisible by 2^4 as required by the depth-4 hourglass).
    x = jax.random.normal(xkey, (2, 3, 8, 8), jnp.float32)

    mid_x, out = generator_forward(x, params)
    mid_x = jax.block_until_ready(mid_x)
    out = jax.block_until_ready(out)

    assert mid_x.shape == (2, 3, 32, 32), mid_x.shape
    assert out.shape == (2, 3, 16, 16), out.shape
    assert jnp.all(jnp.isfinite(mid_x)) and jnp.all(jnp.isfinite(out))
    print("KERNEL_OK")
</pallas_src>

<mosaic_0001>
module attributes {stable_mosaic.version = 11 : i64} {
  func.func @_conv_kernel(%arg0: i32, %arg1: memref<104x16xbf16, #tpu.memory_space<vmem>>, %arg2: memref<9x16x32xbf16, #tpu.memory_space<vmem>>, %arg3: memref<1x32xf32, #tpu.memory_space<vmem>>, %arg4: memref<80x32xf32, #tpu.memory_space<vmem>>) attributes {dimension_semantics = [#tpu.dimension_semantics<parallel>], iteration_bounds = array<i64: 2>, scalar_prefetch = 0 : i64, scratch_operands = 0 : i64, tpu.core_type = #tpu.core_type<tc>, window_params = [{transform_indices = @transform_0, window_bounds = array<i64: 104, 16>}, {pipeline_mode = #tpu.pipeline_mode<synchronous>, transform_indices = @transform_1, window_bounds = array<i64: 9, 16, 32>}, {pipeline_mode = #tpu.pipeline_mode<synchronous>, transform_indices = @transform_2, window_bounds = array<i64: 1, 32>}, {transform_indices = @transform_3, window_bounds = array<i64: 80, 32>}]} {
    %cst = arith.constant 0.000000e+00 : f32
    %0 = vector.broadcast %cst : f32 to vector<80x32xf32>
    %c0 = arith.constant 0 : index
    %c0_0 = arith.constant 0 : index
    %1 = vector.load %arg1[%c0, %c0_0] : memref<104x16xbf16, #tpu.memory_space<vmem>>, vector<80x16xbf16>
    %c0_1 = arith.constant 0 : index
    %c0_2 = arith.constant 0 : index
    %c0_3 = arith.constant 0 : index
    %2 = vector.load %arg2[%c0_1, %c0_2, %c0_3] : memref<9x16x32xbf16, #tpu.memory_space<vmem>>, vector<1x16x32xbf16>
    %3 = vector.shape_cast %2 : vector<1x16x32xbf16> to vector<16x32xbf16>
    %cst_4 = arith.constant dense<0.000000e+00> : vector<80x32xf32>
    %4 = tpu.matmul %1, %3, %cst_4 {dimension_numbers = #tpu.dot_dimension_numbers<[1], [0], [0], [1], [0, 0, 1, 1], [], []>} : vector<80x16xbf16>, vector<16x32xbf16>, vector<80x32xf32> -> vector<80x32xf32>
    %5 = arith.addf %0, %4 : vector<80x32xf32>
    %c1 = arith.constant 1 : index
    %c0_5 = arith.constant 0 : index
    %6 = vector.load %arg1[%c1, %c0_5] : memref<104x16xbf16, #tpu.memory_space<vmem>>, vector<80x16xbf16>
    %c1_6 = arith.constant 1 : index
    %c0_7 = arith.constant 0 : index
    %c0_8 = arith.constant 0 : index
    %7 = vector.load %arg2[%c1_6, %c0_7, %c0_8] : memref<9x16x32xbf16, #tpu.memory_space<vmem>>, vector<1x16x32xbf16>
    %8 = vector.shape_cast %7 : vector<1x16x32xbf16> to vector<16x32xbf16>
    %cst_9 = arith.constant dense<0.000000e+00> : vector<80x32xf32>
    %9 = tpu.matmul %6, %8, %cst_9 {dimension_numbers = #tpu.dot_dimension_numbers<[1], [0], [0], [1], [0, 0, 1, 1], [], []>} : vector<80x16xbf16>, vector<16x32xbf16>, vector<80x32xf32> -> vector<80x32xf32>
    %10 = arith.addf %5, %9 : vector<80x32xf32>
    %c2 = arith.constant 2 : index
    %c0_10 = arith.constant 0 : index
    %11 = vector.load %arg1[%c2, %c0_10] : memref<104x16xbf16, #tpu.memory_space<vmem>>, vector<80x16xbf16>
    %c2_11 = arith.constant 2 : index
    %c0_12 = arith.constant 0 : index
    %c0_13 = arith.constant 0 : index
    %12 = vector.load %arg2[%c2_11, %c0_12, %c0_13] : memref<9x16x32xbf16, #tpu.memory_space<vmem>>, vector<1x16x32xbf16>
    %13 = vector.shape_cast %12 : vector<1x16x32xbf16> to vector<16x32xbf16>
    %cst_14 = arith.constant dense<0.000000e+00> : vector<80x32xf32>
    %14 = tpu.matmul %11, %13, %cst_14 {dimension_numbers = #tpu.dot_dimension_numbers<[1], [0], [0], [1], [0, 0, 1, 1], [], []>} : vector<80x16xbf16>, vector<16x32xbf16>, vector<80x32xf32> -> vector<80x32xf32>
    %15 = arith.addf %10, %14 : vector<80x32xf32>
    %c10 = arith.constant 10 : index
    %c0_15 = arith.constant 0 : index
    %16 = vector.load %arg1[%c10, %c0_15] : memref<104x16xbf16, #tpu.memory_space<vmem>>, vector<80x16xbf16>
    %c3 = arith.constant 3 : index
    %c0_16 = arith.constant 0 : index
    %c0_17 = arith.constant 0 : index
    %17 = vector.load %arg2[%c3, %c0_16, %c0_17] : memref<9x16x32xbf16, #tpu.memory_space<vmem>>, vector<1x16x32xbf16>
    %18 = vector.shape_cast %17 : vector<1x16x32xbf16> to vector<16x32xbf16>
    %cst_18 = arith.constant dense<0.000000e+00> : vector<80x32xf32>
    %19 = tpu.matmul %16, %18, %cst_18 {dimension_numbers = #tpu.dot_dimension_numbers<[1], [0], [0], [1], [0, 0, 1, 1], [], []>} : vector<80x16xbf16>, vector<16x32xbf16>, vector<80x32xf32> -> vector<80x32xf32>
    %20 = arith.addf %15, %19 : vector<80x32xf32>
    %c11 = arith.constant 11 : index
    %c0_19 = arith.constant 0 : index
    %21 = vector.load %arg1[%c11, %c0_19] : memref<104x16xbf16, #tpu.memory_space<vmem>>, vector<80x16xbf16>
    %c4 = arith.constant 4 : index
    %c0_20 = arith.constant 0 : index
    %c0_21 = arith.constant 0 : index
    %22 = vector.load %arg2[%c4, %c0_20, %c0_21] : memref<9x16x32xbf16, #tpu.memory_space<vmem>>, vector<1x16x32xbf16>
    %23 = vector.shape_cast %22 : vector<1x16x32xbf16> to vector<16x32xbf16>
    %cst_22 = arith.constant dense<0.000000e+00> : vector<80x32xf32>
    %24 = tpu.matmul %21, %23, %cst_22 {dimension_numbers = #tpu.dot_dimension_numbers<[1], [0], [0], [1], [0, 0, 1, 1], [], []>} : vector<80x16xbf16>, vector<16x32xbf16>, vector<80x32xf32> -> vector<80x32xf32>
    %25 = arith.addf %20, %24 : vector<80x32xf32>
    %c12 = arith.constant 12 : index
    %c0_23 = arith.constant 0 : index
    %26 = vector.load %arg1[%c12, %c0_23] : memref<104x16xbf16, #tpu.memory_space<vmem>>, vector<80x16xbf16>
    %c5 = arith.constant 5 : index
    %c0_24 = arith.constant 0 : index
    %c0_25 = arith.constant 0 : index
    %27 = vector.load %arg2[%c5, %c0_24, %c0_25] : memref<9x16x32xbf16, #tpu.memory_space<vmem>>, vector<1x16x32xbf16>
    %28 = vector.shape_cast %27 : vector<1x16x32xbf16> to vector<16x32xbf16>
    %cst_26 = arith.constant dense<0.000000e+00> : vector<80x32xf32>
    %29 = tpu.matmul %26, %28, %cst_26 {dimension_numbers = #tpu.dot_dimension_numbers<[1], [0], [0], [1], [0, 0, 1, 1], [], []>} : vector<80x16xbf16>, vector<16x32xbf16>, vector<80x32xf32> -> vector<80x32xf32>
    %30 = arith.addf %25, %29 : vector<80x32xf32>
    %c20 = arith.constant 20 : index
    %c0_27 = arith.constant 0 : index
    %31 = vector.load %arg1[%c20, %c0_27] : memref<104x16xbf16, #tpu.memory_space<vmem>>, vector<80x16xbf16>
    %c6 = arith.constant 6 : index
    %c0_28 = arith.constant 0 : index
    %c0_29 = arith.constant 0 : index
    %32 = vector.load %arg2[%c6, %c0_28, %c0_29] : memref<9x16x32xbf16, #tpu.memory_space<vmem>>, vector<1x16x32xbf16>
    %33 = vector.shape_cast %32 : vector<1x16x32xbf16> to vector<16x32xbf16>
    %cst_30 = arith.constant dense<0.000000e+00> : vector<80x32xf32>
    %34 = tpu.matmul %31, %33, %cst_30 {dimension_numbers = #tpu.dot_dimension_numbers<[1], [0], [0], [1], [0, 0, 1, 1], [], []>} : vector<80x16xbf16>, vector<16x32xbf16>, vector<80x32xf32> -> vector<80x32xf32>
    %35 = arith.addf %30, %34 : vector<80x32xf32>
    %c21 = arith.constant 21 : index
    %c0_31 = arith.constant 0 : index
    %36 = vector.load %arg1[%c21, %c0_31] : memref<104x16xbf16, #tpu.memory_space<vmem>>, vector<80x16xbf16>
    %c7 = arith.constant 7 : index
    %c0_32 = arith.constant 0 : index
    %c0_33 = arith.constant 0 : index
    %37 = vector.load %arg2[%c7, %c0_32, %c0_33] : memref<9x16x32xbf16, #tpu.memory_space<vmem>>, vector<1x16x32xbf16>
    %38 = vector.shape_cast %37 : vector<1x16x32xbf16> to vector<16x32xbf16>
    %cst_34 = arith.constant dense<0.000000e+00> : vector<80x32xf32>
    %39 = tpu.matmul %36, %38, %cst_34 {dimension_numbers = #tpu.dot_dimension_numbers<[1], [0], [0], [1], [0, 0, 1, 1], [], []>} : vector<80x16xbf16>, vector<16x32xbf16>, vector<80x32xf32> -> vector<80x32xf32>
    %40 = arith.addf %35, %39 : vector<80x32xf32>
    %c22 = arith.constant 22 : index
    %c0_35 = arith.constant 0 : index
    %41 = vector.load %arg1[%c22, %c0_35] : memref<104x16xbf16, #tpu.memory_space<vmem>>, vector<80x16xbf16>
    %c8 = arith.constant 8 : index
    %c0_36 = arith.constant 0 : index
    %c0_37 = arith.constant 0 : index
    %42 = vector.load %arg2[%c8, %c0_36, %c0_37] : memref<9x16x32xbf16, #tpu.memory_space<vmem>>, vector<1x16x32xbf16>
    %43 = vector.shape_cast %42 : vector<1x16x32xbf16> to vector<16x32xbf16>
    %cst_38 = arith.constant dense<0.000000e+00> : vector<80x32xf32>
    %44 = tpu.matmul %41, %43, %cst_38 {dimension_numbers = #tpu.dot_dimension_numbers<[1], [0], [0], [1], [0, 0, 1, 1], [], []>} : vector<80x16xbf16>, vector<16x32xbf16>, vector<80x32xf32> -> vector<80x32xf32>
    %45 = arith.addf %40, %44 : vector<80x32xf32>
    %c0_39 = arith.constant 0 : index
    %c0_40 = arith.constant 0 : index
    %46 = vector.load %arg3[%c0_39, %c0_40] : memref<1x32xf32, #tpu.memory_space<vmem>>, vector<1x32xf32>
    %47 = vector.broadcast %46 : vector<1x32xf32> to vector<80x32xf32>
    %48 = arith.addf %45, %47 : vector<80x32xf32>
    %cst_41 = arith.constant 0.000000e+00 : f32
    %49 = vector.broadcast %cst_41 : f32 to vector<80x32xf32>
    %50 = arith.maximumf %48, %49 : vector<80x32xf32>
    %c0_42 = arith.constant 0 : index
    %c0_43 = arith.constant 0 : index
    %51 = vector.load %arg4[%c0_42, %c0_43] : memref<80x32xf32, #tpu.memory_space<vmem>>, vector<80x32xf32>
    tpu.vector_store %arg4[%c0_42, %c0_43], %50 {strides = array<i32>} : memref<80x32xf32, #tpu.memory_space<vmem>>, vector<80x32xf32>,
    return
  }
  func.func @transform_0(%arg0: i32) -> (i32, i32) {
    %c0_i32 = arith.constant 0 : i32
    %c0_i32_0 = arith.constant 0 : i32
    return %arg0, %c0_i32 : i32, i32
  }
  func.func @transform_1(%arg0: i32) -> (i32, i32, i32) {
    %c0_i32 = arith.constant 0 : i32
    %c0_i32_0 = arith.constant 0 : i32
    %c0_i32_1 = arith.constant 0 : i32
    %c0_i32_2 = arith.constant 0 : i32
    return %c0_i32, %c0_i32_0, %c0_i32_1 : i32, i32, i32
  }
  func.func @transform_2(%arg0: i32) -> (i32, i32) {
    %c0_i32 = arith.constant 0 : i32
    %c0_i32_0 = arith.constant 0 : i32
    %c0_i32_1 = arith.constant 0 : i32
    return %c0_i32, %c0_i32_0 : i32, i32
  }
  func.func @transform_3(%arg0: i32) -> (i32, i32) {
    %c0_i32 = arith.constant 0 : i32
    %c0_i32_0 = arith.constant 0 : i32
    return %arg0, %c0_i32 : i32, i32
  }
}

</mosaic_0001>

<bundles_post_ra>
// kernel: tpu_custom_call.1
= control target key start
LH: loop header
LB: loop body
LE: loop exit
PB: predicated region body
PF: predicated region fallthrough
CT: control target
= control target key end

     0   :  { %s1984_s12 = smov 0   ;;  %s2396_s0 = inlined_call_operand.vmem [shape: bf16[208,16], index: 0, kind: input, shape index: {}]   ;;  %s2397_s1 = inlined_call_operand.vmem [shape: bf16[9,16,32], index: 1, kind: input, shape index: {}]   ;;  %s2398_s2 = inlined_call_operand.vmem [shape: f32[1,32], index: 2, kind: input, shape index: {}]   ;;  %s2399_s3 = inlined_call_operand.vmem [shape: f32[160,32], index: 3, kind: output, shape index: {}]  }
   0x1 LB: > { %s1555_s13 = sadd.s32 4294967295, %s1960_s12   ;;  %p1559_p0 = scmp.ge.s32.totalorder %s1960_s12, 1  ;;  %s1960_s12 = sphi %s1984_s12, %s13_s12  }
   0x2   : > { %p138_p1 = scmp.lt.s32.totalorder %s1960_s12, 3 }
   0x4   : > { %p139_p2 = pnand %p1559_p0, %p138_p1 }
   0x5   : > { %v1922_v0 = vld [vmem:[%s2397_s1 + $0x8] sm:$0xff] (!%p139_p2)   ;;  %v1962_v1 = vmov (!%p139_p2), 0.0   ;;  %s162_s16 = smul.u32 (!%p139_p2), 13, %s1555_s13  ;;  %vm1963_vm0 = vmmov (!%p139_p2), 0   ;;  %vm219_vm1 = vsmask.f32 (!%p139_p2), 7424 }
   0x6   : > { %142 = sbr.rel (%p139_p2) target bundleno = 423 (0x1a7), region = 32  ;;  %1712 = vmatprep.subr.bf16.mxu0 (!%p139_p2), %v1962_v1  ;;  %1910 = vmatprep.subr.bf16.mxu1 (!%p139_p2), %v1962_v1  ;;  %vm270_vm2 = vcmask (!%p139_p2), 130048   ;;  %v1927_v20 = vld [vmem:[%s2397_s1 + $0x10] sm:$0xff] (!%p139_p2)   ;;  %v1928_v24 = vld [vmem:[%s2397_s1] sm:$0xff] (!%p139_p2)   ;;  %vm455_vm3 = vcmask (!%p139_p2), 1046528   ;;  %v1931_v46 = vld [vmem:[%s2397_s1 + $0x18] sm:$0xff] (!%p139_p2)  }
   0x7   : > { %1713 = vmatpush3.bf16.msra.mxu0 (!%p139_p2), %v1922_v0  ;;  %1911 = vmatpush3.bf16.msra.mxu1 (!%p139_p2), %v1922_v0  ;;  %p163_p3 = scmp.lt.s32.totalorder (!%p139_p2), %s162_s16, 25  ;;  %v1933_v50 = vld [vmem:[%s2397_s1 + $0x20] sm:$0xff] (!%p139_p2)   ;;  %vm735_vm4 = vsmask.f32 (!%p139_p2), 6400  ;;  %vm900_vm5 = vcmask (!%p139_p2), 1045504   ;;  %vm1345_vm7 = vcmask (!%p139_p2), 1044480  }
   0x8   : > { %1714 = vmatprep.mubr.msk.bf16.mxu0 (!%p139_p2), %vm1963_vm0, %v1962_v1  ;;  %1726 = vmatprep.mubr.msk.bf16.mxu1 (!%p139_p2), %vm1963_vm0, %v1962_v1  ;;  %vm1180_vm6 = vsmask.f32 (!%p139_p2), 5376  ;;  %s168_s10 = smul.u32 (!%p139_p2), 10, %s1555_s13  ;;  %vm1488_vm8 = vcmask (!%p139_p2), 261120  }
   0x9   : > { %1756 = vmatprep.subr.bf16.mxu0 (!%p139_p2), %v1962_v1  ;;  %1734 = vmatprep.subr.bf16.mxu1 (!%p139_p2), %v1962_v1 }
   0xa   : > { %p169_p4 = scmp.lt.s32.totalorder (!%p139_p2), %s168_s10, 19 }
   0xd   : > { %s2401_s16 = smov (!%p163_p3, %s162_s16), 25  ;;  %s2403_s10 = smov (!%p169_p4, %s168_s10), 19 }
   0xe   : > { %s1560_s17 = sshll.u32 %s2401_s16, 2  ;;  %s1561_s13 = sshll.u32 %s2403_s10, 3 }
   0xf   : > { %s2008_s20 = scalar_lea.vmem %s2396_s0, %s1560_s17  ;;  %s2356_s17 = scalar_lea.vmem %s2399_s3, %s1561_s13 }
  0x10   : > { %v175_v2 = vld [vmem:[%s2008_s20] sm:$0xf]  ;;  %v176_v3 = vld [vmem:[%s2008_s20 + $0x4] sm:$0xf]  ;;  %v2013_v5 = vld [vmem:[%s2008_s20 + $0x8] sm:$0xff]  }
  0x11   : > { %v1564_v4 = vcombine.low %v175_v2, %v176_v3  ;;  %v228_v8 = vshll.u32 %v2013_v5, 16  ;;  %v2017_v9 = vld [vmem:[%s2008_s20 + $0x18] sm:$0xff]   ;;  %v2020_v10 = vld [vmem:[%s2008_s20 + $0x20] sm:$0xff]   ;;  %v2023_v11 = vld [vmem:[%s2008_s20 + $0x10] sm:$0xff]   ;;  %v232_v21 = vshrl.u32 %v2013_v5, 16  ;;  %v457_v48 = vrot.slane %v2013_v5, 1 }
  0x12   : > { %v244_v14 = vshll.u32 %v2017_v9, 16  ;;  %v248_v15 = vshrl.u32 %v2017_v9, 16  ;;  %v252_v16 = vshll.u32 %v2020_v10, 16  ;;  %v2029_v17 = vld [vmem:[%s2008_s20 + $0x28] ss:$0 sps:$4 sm:$0x11]  }
  0x13   : > { %v221_v6 = vshrl.u32 %v1564_v4, 16  ;;  %v223_v7 = vshll.u32 %v1564_v4, 16  ;;  %v230_v13 = vrot.slane %v228_v8, 1  ;;  %v236_v22 = vshll.u32 %v2023_v11, 16  ;;  %v2054_v36 = vld [vmem:[%s2008_s20 + $0x24] sm:$0xff]   ;;  %v2121_v60 = vld [vmem:[%s2008_s20 + $0xc] sm:$0xff]  }
  0x14   : > { %v246_v19 = vrot.slane %v244_v14, 1  ;;  %v254_v23 = vrot.slane %v252_v16, 1  ;;  %v256_v27 = vshrl.u32 %v2020_v10, 16  ;;  %v260_v28 = vshll.u32 %v2029_v17, 16  ;;  %v448_v40 = vld [vmem:[%s2008_s20] sm:$0xe] }
  0x15   : > { %v225_v12 = vrot.slane %v223_v7, 1  ;;  %v234_v30 = vor.u32 %v232_v21, %v230_v13  ;;  %v238_v31 = vrot.slane %v236_v22, 1  ;;  %v240_v35 = vshrl.u32 %v2023_v11, 16  ;;  %v1941_v37 = vld [vmem:[%s2008_s20 + $0x2c] ss:$0 sps:$4 sm:$0x11]  }
  0x16   : > { %v250_v26 = vor.u32 %v248_v15, %v246_v19  ;;  %v258_v32 = vor.u32 %v256_v27, %v254_v23  ;;  %v262_v33 = vrot.slane %v260_v28, 1  ;;  %v620_v41 = vrot.slane %v2054_v36, 1  ;;  %v571_v56 = vld [vmem:[%s2008_s20 + $0x4] sm:$0xe]  ;;  %v2116_v57 = vld [vmem:[%s2008_s20 + $0x8] sm:$0xf] }
  0x17   : > { %v226_v18 = vor.u32 %v225_v12, %v221_v6  ;;  %v239_v34 = vsel %vm219_vm1, %v234_v30, %v238_v31  ;;  %v242_v39 = vor.u32 %v240_v35, %v238_v31  ;;  %v622_v42 = vrot.slane %v1941_v37, 1  ;;  %v1936_v12 = vld [vmem:[%s2397_s1 + $0x28] sm:$0xff]  }
  0x18   : > { %v255_v29 = vsel %vm219_vm1, %v250_v26, %v254_v23  ;;  %v263_v38 = vsel %vm219_vm1, %v258_v32, %v262_v33  ;;  %v1584_v45 = vcombine.low %v448_v40, %v176_v3  ;;  %v459_v51 = vrot.slane %v2023_v11, 1  ;;  %v2158_v23 = vld [vmem:[%s2008_s20 + $0x1c] sm:$0xff]  }
  0x19   : > { %v231_v25 = vsel %vm219_vm1, %v226_v18, %v230_v13  ;;  %1727 = vmatmul.mubr.msk.bf16.vlgmr.msra.gmra.mrb[0].mxu1 %vm270_vm2, %v255_v29  ;;  %v2069_v43 = vsel %vm455_vm3, %v620_v41, %v622_v42  ;;  %v247_v44 = vsel %vm219_vm1, %v242_v39, %v246_v19  ;;  %v461_v53 = vrot.slane %v2017_v9, 1  ;;  %v2140_v13 = vld [vmem:[%s2008_s20 + $0x14] sm:$0xff]   ;;  %v2182_v39 = vld [vmem:[%s2008_s20 + $0x2c] ss:$0 sps:$4 sm:$0x33]  }
  0x1a   : > { %1715 = vmatmul.mubr.msk.bf16.vlgmr.msra.gmra.mrb[0].mxu0 %vm270_vm2, %v231_v25  ;;  %1735 = vmatpush3.bf16.msra.mxu1 %v1928_v24  ;;  %v456_v47 = vrot.slane %v1584_v45, 1  ;;  %v460_v52 = vsel %vm455_vm3, %v457_v48, %v459_v51  ;;  %v463_v55 = vrot.slane %v2020_v10, 1  ;;  %v1593_v59 = vcombine.low %v571_v56, %v2116_v57  ;;  %v1938_v19 = vld [vmem:[%s2397_s1 + $0x30] sm:$0xff]  }
  0x1b   : > { %1757 = vmatpush3.bf16.msra.mxu0 %v1927_v20  ;;  %1718 = vmatprep.mubr.msk.bf16.mxu0 %vm1963_vm0, %v1962_v1  ;;  %v462_v54 = vsel %vm455_vm3, %v459_v51, %v461_v53  ;;  %v465_v61 = vrot.slane %v2029_v17, 1  ;;  %v745_v0 = vshrl.u32 %v2121_v60, 16  ;;  %v748_v2 = vshll.u32 %v2121_v60, 16  ;;  %v1016_v51 = vld [vmem:[%s2008_s20 + $0x8] sm:$0xc] }
  0x1c   : > { %1800 = vmatprep.subr.bf16.mxu0 %v1962_v1  ;;  %1730 = vmatprep.mubr.msk.bf16.mxu1 %vm1963_vm0, %v1962_v1  ;;  %v458_v49 = vsel %vm455_vm3, %v456_v47, %v457_v48  ;;  %v464_v58 = vsel %vm455_vm3, %v461_v53, %v463_v55  ;;  %v737_v62 = vshrl.u32 %v1593_v59, 16  ;;  %v740_v63 = vshll.u32 %v1593_v59, 16 }
  0x1d   : > { %1778 = vmatprep.subr.bf16.mxu1 %v1962_v1  ;;  %v613_v3 = vrot.slane %v1593_v59, 1  ;;  %v747_v8 = vrot.slane %v745_v0, 1  ;;  %v754_v15 = vshrl.u32 %v2140_v13, 16  ;;  %v757_v16 = vshll.u32 %v2140_v13, 16  ;;  %v2232_v0 = vld [vmem:[%s2008_s20 + $0x18] sm:$0xff]  }
  0x1e   : > { %v739_v6 = vrot.slane %v737_v62, 1  ;;  %v742_v7 = vrot.slane %v740_v63, 2  ;;  %v616_v17 = vrot.slane %v2140_v13, 1  ;;  %v763_v25 = vshrl.u32 %v2158_v23, 16  ;;  %v1947_v63 = vld [vmem:[%s2397_s1 + $0x40] sm:$0xff]  }
  0x1f   : > { %v756_v20 = vrot.slane %v754_v15, 1  ;;  %v759_v21 = vrot.slane %v757_v16, 2  ;;  %v766_v26 = vshll.u32 %v2158_v23, 16  ;;  %v618_v27 = vrot.slane %v2158_v23, 1 }
  0x20   : > { %v765_v29 = vrot.slane %v763_v25, 1  ;;  %v772_v33 = vshrl.u32 %v2054_v36, 16  ;;  %v784_v45 = vshll.u32 %v2182_v39, 16 }
  0x21   : > { %1731 = vmatmul.mubr.msk.bf16.gmra.mrb[4].mxu1 %vm270_vm2, %v263_v38  ;;  %v760_v24 = vor.u32 %v759_v21, %v756_v20  ;;  %v768_v30 = vrot.slane %v766_v26, 2  ;;  %v619_v31 = vsel %vm455_vm3, %v616_v17, %v618_v27  ;;  %v621_v40 = vsel %vm455_vm3, %v618_v27, %v620_v41  ;;  %v1338_v26 = vld [vmem:[%s2008_s20 + $0x8] sm:$0x8] }
  0x22   : > { %1719 = vmatmul.mubr.msk.bf16.gmra.mrb[4].mxu0 %vm270_vm2, %v239_v34  ;;  %1736 = vmatprep.mubr.msk.bf16.mxu1 %vm1963_vm0, %v1962_v1  ;;  %v775_v34 = vshll.u32 %v2054_v36, 16  ;;  %v774_v37 = vrot.slane %v772_v33, 1  ;;  %v786_v48 = vrot.slane %v784_v45, 2 }
  0x23   : > { %1722 = vmatprep.mubr.msk.bf16.mxu0 %vm1963_vm0, %v1962_v1  ;;  %v769_v32 = vor.u32 %v768_v30, %v765_v29  ;;  %v1199_v29 = vshrl.u32 %v2232_v0, 16  ;;  %v1202_v30 = vshll.u32 %v2232_v0, 16 }
  0x24   : > { %v777_v38 = vrot.slane %v775_v34, 2 }
  0x25   : > { %v770_v35 = vsel %vm735_vm4, %v760_v24, %v769_v32  ;;  %v1201_v34 = vrot.slane %v1199_v29, 2 }
  0x26   : > { %v778_v42 = vor.u32 %v777_v38, %v774_v37 }
  0x28   : > { %v779_v41 = vsel %vm735_vm4, %v769_v32, %v778_v42 }
  0x29   : > { %1737 = vmatmul.mubr.msk.bf16.vlgmr.msra.gmra.mrb[8].mxu1 %vm270_vm2, %v1564_v4  ;;  %v614_v4 = vrot.slane %v2121_v60, 1 }
  0x2a   : > { %1723 = vmatmul.mubr.msk.bf16.gmra.mrb[8].mxu0 %vm270_vm2, %v247_v44  ;;  %1779 = vmatpush3.bf16.msra.mxu1 %v1931_v46  ;;  %v781_v44 = vshrl.u32 %v2182_v39, 16  ;;  %v893_v46 = vld [vmem:[%s2008_s20 + $0x4] sm:$0xc] }
  0x2b   : > { %1758 = vmatprep.mubr.msk.bf16.mxu0 %vm1963_vm0, %v1962_v1  ;;  %1740 = vmatprep.mubr.msk.bf16.mxu1 %vm1963_vm0, %v1962_v1  ;;  %v617_v22 = vsel %vm455_vm3, %v614_v4, %v616_v17 }
  0x2c   : > { %1822 = vmatprep.subr.bf16.mxu1 %v1962_v1  ;;  %v783_v47 = vrot.slane %v781_v44, 1 }
  0x31   : > { %1741 = vmatmul.mubr.msk.bf16.gmra.mrb[12].mxu1 %vm270_vm2, %v2013_v5  ;;  %v466_v5 = vsel %vm455_vm3, %v463_v55, %v465_v61  ;;  %v904_v61 = vrot.slane %v2140_v13, 2 }
  0x32   : > { %1759 = vmatmul.mubr.msk.bf16.vlgmr.msra.gmra.mrb[12].mxu0 %vm270_vm2, %v458_v49  ;;  %1744 = vmatprep.mubr.msk.bf16.mxu1 %vm1963_vm0, %v1962_v1  ;;  %v1616_v49 = vcombine.low %v893_v46, %v2116_v57  ;;  %v2213_v57 = vld [vmem:[%s2008_s20 + $0x10] sm:$0xff]  }
  0x33   : > { %1801 = vmatpush3.bf16.msra.mxu0 %v1933_v50  ;;  %1762 = vmatprep.mubr.msk.bf16.mxu0 %vm1963_vm0, %v1962_v1  ;;  %v787_v50 = vor.u32 %v786_v48, %v783_v47  ;;  %v1190_v16 = vshrl.u32 %v2213_v57, 16  ;;  %v1193_v17 = vshll.u32 %v2213_v57, 16  ;;  %v1347_v38 = vrot.slane %v2213_v57, 3 }
  0x34   : > { %1844 = vmatprep.subr.bf16.mxu0 %v1962_v1  ;;  %v901_v53 = vrot.slane %v1616_v49, 2  ;;  %v1349_v47 = vrot.slane %v2232_v0, 3 }
  0x35   : > { %v788_v55 = vsel %vm735_vm4, %v778_v42, %v787_v50 }
  0x39   : > { %1745 = vmatmul.mubr.msk.bf16.gmra.mrb[16].mxu1 %vm270_vm2, %v2023_v11  ;;  %v615_v11 = vsel %vm455_vm3, %v613_v3, %v614_v4  ;;  %v1061_v3 = vrot.slane %v2232_v0, 2  ;;  %v906_v4 = vrot.slane %v2158_v23, 2  ;;  %v1192_v23 = vrot.slane %v1190_v16, 2 }
  0x3a   : > { %1763 = vmatmul.mubr.msk.bf16.gmra.mrb[16].mxu0 %vm270_vm2, %v460_v52  ;;  %1748 = vmatprep.mubr.msk.bf16.mxu1 %vm1963_vm0, %v1962_v1  ;;  %v2205_v52 = vld [vmem:[%s2008_s20 + $0xc] sm:$0xf] }
  0x3b   : > { %1766 = vmatprep.mubr.msk.bf16.mxu0 %vm1963_vm0, %v1962_v1  ;;  %v1625_v56 = vcombine.low %v1016_v51, %v2205_v52  ;;  %v1648_v32 = vcombine.low %v1338_v26, %v2205_v52  ;;  %v1350_v51 = vsel %vm1345_vm7, %v1347_v38, %v1349_v47 }
  0x3d   : > { %v1058_v59 = vrot.slane %v1625_v56, 2  ;;  %v1185_v15 = vshll.u32 %v1625_v56, 16  ;;  %v1346_v37 = vrot.slane %v1648_v32, 3 }
  0x3f   : > { %v1348_v44 = vsel %vm1345_vm7, %v1346_v37, %v1347_v38 }
  0x41   : > { %1749 = vmatmul.mubr.msk.bf16.gmra.mrb[20].mxu1 %vm270_vm2, %v2017_v9  ;;  %v750_v9 = vrot.slane %v748_v2, 2 }
  0x42   : > { %1767 = vmatmul.mubr.msk.bf16.gmra.mrb[20].mxu0 %vm270_vm2, %v462_v54  ;;  %1752 = vmatprep.mubr.msk.bf16.mxu1 %vm1963_vm0, %v1962_v1  ;;  %v902_v54 = vrot.slane %v2121_v60, 2  ;;  %v1059_v60 = vrot.slane %v2213_v57, 2 }
  0x43   : > { %1770 = vmatprep.mubr.msk.bf16.mxu0 %vm1963_vm0, %v1962_v1  ;;  %v751_v14 = vor.u32 %v750_v9, %v747_v8  ;;  %v908_v9 = vrot.slane %v2054_v36, 2  ;;  %v1182_v36 = vshrl.u32 %v1625_v56, 16 }
  0x44   : > { %v1060_v62 = vsel %vm900_vm5, %v1058_v59, %v1059_v60  ;;  %v905_v2 = vsel %vm900_vm5, %v902_v54, %v904_v61 }
  0x45   : > { %v761_v28 = vsel %vm735_vm4, %v751_v14, %v760_v24  ;;  %v909_v13 = vsel %vm900_vm5, %v906_v4, %v908_v9  ;;  %v1184_v21 = vrot.slane %v1182_v36, 2  ;;  %v1195_v24 = vrot.slane %v1193_v17, 3 }
  0x49   : > { %1753 = vmatmul.mubr.msk.bf16.gmra.mrb[24].mxu1 %vm270_vm2, %v2020_v10  ;;  %v743_v10 = vor.u32 %v742_v7, %v739_v6  ;;  %v2245_v6 = vld [vmem:[%s2008_s20 + $0x20] sm:$0xff]   ;;  %v907_v7 = vsel %vm900_vm5, %v904_v61, %v906_v4 }
  0x4a   : > { %1771 = vmatmul.mubr.msk.bf16.gmra.mrb[24].mxu0 %vm270_vm2, %v464_v58  ;;  %1780 = vmatprep.mubr.msk.bf16.mxu1 %vm1963_vm0, %v1962_v1  ;;  %v903_v58 = vsel %vm900_vm5, %v901_v53, %v902_v54  ;;  %v1063_v8 = vrot.slane %v2245_v6, 2  ;;  %v1211_v42 = vshll.u32 %v2245_v6, 16  ;;  %v1351_v56 = vrot.slane %v2245_v6, 3 }
  0x4b   : > { %1774 = vmatprep.mubr.msk.bf16.mxu0 %vm1963_vm0, %v1962_v1  ;;  %v752_v18 = vsel %vm735_vm4, %v743_v10, %v751_v14  ;;  %v910_v14 = vrot.slane %v2182_v39, 2 }
  0x4c   : > { %v1352_v59 = vsel %vm1345_vm7, %v1349_v47, %v1351_v56 }
  0x4d   : > { %v911_v20 = vsel %vm900_vm5, %v908_v9, %v910_v14 }
  0x51   : > { %1781 = vmatmul.mubr.msk.bf16.vlgmr.msra.gmra.mrb[28].mxu1 %vm270_vm2, %v615_v11  ;;  %v1064_v11 = vsel %vm900_vm5, %v1061_v3, %v1063_v8 }
  0x52   : > { %1775 = vmatmul.mubr.msk.bf16.gmra.mrb[28].mxu0 %vm270_vm2, %v466_v5  ;;  %1823 = vmatpush3.bf16.msra.mxu1 %v1936_v12  ;;  %v1062_v5 = vsel %vm900_vm5, %v1059_v60, %v1061_v3  ;;  %v2258_v12 = vld [vmem:[%s2008_s20 + $0x28] sm:$0xff]  }
  0x53   : > { %1802 = vmatprep.mubr.msk.bf16.mxu0 %vm1963_vm0, %v1962_v1  ;;  %1784 = vmatprep.mubr.msk.bf16.mxu1 %vm1963_vm0, %v1962_v1  ;;  %v1065_v10 = vrot.slane %v2258_v12, 2  ;;  %v1217_v49 = vshrl.u32 %v2258_v12, 16  ;;  %v1220_v50 = vshll.u32 %v2258_v12, 16 }
  0x54   : > { %1866 = vmatprep.subr.bf16.mxu1 %v1962_v1 }
  0x55   : > { %v1219_v53 = vrot.slane %v1217_v49, 2  ;;  %v1222_v54 = vrot.slane %v1220_v50, 3 }
  0x57   : > { %v1223_v57 = vor.u32 %v1222_v54, %v1219_v53 }
  0x59   : > { %1785 = vmatmul.mubr.msk.bf16.gmra.mrb[32].mxu1 %vm270_vm2, %v617_v22  ;;  %v1187_v22 = vrot.slane %v1185_v15, 3 }
  0x5a   : > { %1803 = vmatmul.mubr.msk.bf16.vlgmr.msra.gmra.mrb[32].mxu0 %vm270_vm2, %v752_v18  ;;  %1788 = vmatprep.mubr.msk.bf16.mxu1 %vm1963_vm0, %v1962_v1  ;;  %v1066_v18 = vsel %vm900_vm5, %v1063_v8, %v1065_v10 }
  0x5b   : > { %1845 = vmatpush3.bf16.msra.mxu0 %v1938_v19  ;;  %1806 = vmatprep.mubr.msk.bf16.mxu0 %vm1963_vm0, %v1962_v1  ;;  %v1951_v19 = vld [vmem:[%s2008_s20 + $0x30] ss:$0 sps:$4 sm:$0x33]   ;;  %v1188_v27 = vor.u32 %v1187_v22, %v1184_v21 }
  0x5c   : > { %1888 = vmatprep.subr.bf16.mxu0 %v1962_v1  ;;  %v1067_v25 = vrot.slane %v1951_v19, 2 }
  0x61   : > { %1789 = vmatmul.mubr.msk.bf16.gmra.mrb[36].mxu1 %vm270_vm2, %v619_v31  ;;  %v1068_v31 = vsel %vm900_vm5, %v1065_v10, %v1067_v25 }
  0x62   : > { %1807 = vmatmul.mubr.msk.bf16.gmra.mrb[36].mxu0 %vm270_vm2, %v761_v28  ;;  %1792 = vmatprep.mubr.msk.bf16.mxu1 %vm1963_vm0, %v1962_v1  ;;  %v1196_v28 = vor.u32 %v1195_v24, %v1192_v23 }
  0x63   : > { %1810 = vmatprep.mubr.msk.bf16.mxu0 %vm1963_vm0, %v1962_v1 }
  0x64   : > { %v1197_v33 = vsel %vm1180_vm6, %v1188_v27, %v1196_v28 }
  0x69   : > { %1793 = vmatmul.mubr.msk.bf16.gmra.mrb[40].mxu1 %vm270_vm2, %v621_v40  ;;  %v1208_v40 = vshrl.u32 %v2245_v6, 16 }
  0x6a   : > { %1811 = vmatmul.mubr.msk.bf16.gmra.mrb[40].mxu0 %vm270_vm2, %v770_v35  ;;  %1796 = vmatprep.mubr.msk.bf16.mxu1 %vm1963_vm0, %v1962_v1  ;;  %v1204_v35 = vrot.slane %v1202_v30, 3 }
  0x6b   : > { %1814 = vmatprep.mubr.msk.bf16.mxu0 %vm1963_vm0, %v1962_v1  ;;  %v1210_v46 = vrot.slane %v1208_v40, 2 }
  0x6c   : > { %v1205_v39 = vor.u32 %v1204_v35, %v1201_v34 }
  0x6e   : > { %v1206_v45 = vsel %vm1180_vm6, %v1196_v28, %v1205_v39 }
  0x71   : > { %1797 = vmatmul.mubr.msk.bf16.gmra.mrb[44].mxu1 %vm270_vm2, %v2069_v43  ;;  %v1944_v43 = vld [vmem:[%s2397_s1 + $0x38] sm:$0xff]  }
  0x72   : > { %1815 = vmatmul.mubr.msk.bf16.gmra.mrb[44].mxu0 %vm270_vm2, %v779_v41  ;;  %1824 = vmatprep.mubr.msk.bf16.mxu1 %vm1963_vm0, %v1962_v1  ;;  %v1213_v41 = vrot.slane %v1211_v42, 3 }
  0x73   : > { %1818 = vmatprep.mubr.msk.bf16.mxu0 %vm1963_vm0, %v1962_v1 }
  0x74   : > { %v1214_v48 = vor.u32 %v1213_v41, %v1210_v46 }
  0x76   : > { %v1215_v52 = vsel %vm1180_vm6, %v1205_v39, %v1214_v48  ;;  %v1224_v60 = vsel %vm1180_vm6, %v1214_v48, %v1223_v57 }
  0x79   : > { %1825 = vmatmul.mubr.msk.bf16.vlgmr.msra.gmra.mrb[48].mxu1 %vm270_vm2, %v903_v58 }
  0x7a   : > { %1819 = vmatmul.mubr.msk.bf16.gmra.mrb[48].mxu0 %vm270_vm2, %v788_v55  ;;  %1867 = vmatpush3.bf16.msra.mxu1 %v1944_v43  ;;  %v1953_v55 = vld [vmem:[%s2008_s20 + $0x30] ss:$0 sps:$4 sm:$0x77]  }
  0x7b   : > { %1846 = vmatprep.mubr.msk.bf16.mxu0 %vm1963_vm0, %v1962_v1  ;;  %1828 = vmatprep.mubr.msk.bf16.mxu1 %vm1963_vm0, %v1962_v1  ;;  %v1226_v58 = vshrl.u32 %v1953_v55, 16  ;;  %v1229_v43 = vshll.u32 %v1953_v55, 16  ;;  %v1355_v4 = vrot.slane %v1953_v55, 3 }
  0x7d   : > { %v1228_v61 = vrot.slane %v1226_v58, 2 }
  0x81   : > { %1829 = vmatmul.mubr.msk.bf16.gmra.mrb[52].mxu1 %vm270_vm2, %v905_v2 }
  0x82   : > { %1847 = vmatmul.mubr.msk.bf16.vlgmr.msra.gmra.mrb[52].mxu0 %vm270_vm2, %v1060_v62  ;;  %1832 = vmatprep.mubr.msk.bf16.mxu1 %vm1963_vm0, %v1962_v1  ;;  %v1231_v62 = vrot.slane %v1229_v43, 3 }
  0x83   : > { %1889 = vmatpush3.bf16.msra.mxu0 %v1947_v63  ;;  %1850 = vmatprep.mubr.msk.bf16.mxu0 %vm1963_vm0, %v1962_v1  ;;  %v1353_v63 = vrot.slane %v2258_v12, 3 }
  0x84   : > { %v1232_v0 = vor.u32 %v1231_v62, %v1228_v61 }
  0x85   : > { %v1354_v2 = vsel %vm1345_vm7, %v1351_v56, %v1353_v63 }
  0x86   : > { %v1233_v3 = vsel %vm1180_vm6, %v1223_v57, %v1232_v0 }
  0x89   : > { %1833 = vmatmul.mubr.msk.bf16.gmra.mrb[56].mxu1 %vm270_vm2, %v907_v7 }
  0x8a   : > { %1851 = vmatmul.mubr.msk.bf16.gmra.mrb[56].mxu0 %vm270_vm2, %v1062_v5  ;;  %1836 = vmatprep.mubr.msk.bf16.mxu1 %vm1963_vm0, %v1962_v1  ;;  %v1356_v5 = vsel %vm1345_vm7, %v1353_v63, %v1355_v4 }
  0x8b   : > { %1854 = vmatprep.mubr.msk.bf16.mxu0 %vm1963_vm0, %v1962_v1 }
  0x91   : > { %1837 = vmatmul.mubr.msk.bf16.gmra.mrb[60].mxu1 %vm270_vm2, %v909_v13 }
  0x92   : > { %1855 = vmatmul.mubr.msk.bf16.gmra.mrb[60].mxu0 %vm270_vm2, %v1064_v11  ;;  %1840 = vmatprep.mubr.msk.bf16.mxu1 %vm1963_vm0, %v1962_v1 }
  0x93   : > { %1858 = vmatprep.mubr.msk.bf16.mxu0 %vm1963_vm0, %v1962_v1 }
  0x99   : > { %1841 = vmatmul.mubr.msk.bf16.gmra.mrb[64].mxu1 %vm270_vm2, %v911_v20 }
  0x9a   : > { %1859 = vmatmul.mubr.msk.bf16.gmra.mrb[64].mxu0 %vm270_vm2, %v1066_v18  ;;  %1868 = vmatprep.mubr.msk.bf16.mxu1 %vm1963_vm0, %v1962_v1 }
  0x9b   : > { %1862 = vmatprep.mubr.msk.bf16.mxu0 %vm1963_vm0, %v1962_v1 }
  0xa1   : > { %1869 = vmatmul.mubr.msk.bf16.vlgmr.msra.gmra.mrb[68].mxu1 %vm270_vm2, %v1197_v33 }
  0xa2   : > { %1863 = vmatmul.mubr.msk.bf16.gmra.mrb[68].mxu0 %vm270_vm2, %v1068_v31  ;;  %1872 = vmatprep.mubr.msk.bf16.mxu1 %vm1963_vm0, %v1962_v1 }
  0xa3   : > { %1890 = vmatprep.mubr.msk.bf16.mxu0 %vm1963_vm0, %v1962_v1 }
  0xa9   : > { %1873 = vmatmul.mubr.msk.bf16.gmra.mrb[72].mxu1 %vm270_vm2, %v1206_v45 }
  0xaa   : > { %1891 = vmatmul.mubr.msk.bf16.vlgmr.msra.gmra.mrb[72].mxu0 %vm270_vm2, %v1348_v44  ;;  %1876 = vmatprep.mubr.msk.bf16.mxu1 %vm1963_vm0, %v1962_v1 }
  0xab   : > { %1894 = vmatprep.mubr.msk.bf16.mxu0 %vm1963_vm0, %v1962_v1 }
  0xb1   : > { %1877 = vmatmul.mubr.msk.bf16.gmra.mrb[76].mxu1 %vm270_vm2, %v1215_v52 }
  0xb2   : > { %1895 = vmatmul.mubr.msk.bf16.gmra.mrb[76].mxu0 %vm270_vm2, %v1350_v51  ;;  %1880 = vmatprep.mubr.msk.bf16.mxu1 %vm1963_vm0, %v1962_v1 }
  0xb3   : > { %1898 = vmatprep.mubr.msk.bf16.mxu0 %vm1963_vm0, %v1962_v1 }
  0xb9   : > { %1881 = vmatmul.mubr.msk.bf16.gmra.mrb[80].mxu1 %vm270_vm2, %v1224_v60 }
  0xba   : > { %1899 = vmatmul.mubr.msk.bf16.gmra.mrb[80].mxu0 %vm270_vm2, %v1352_v59  ;;  %1884 = vmatprep.mubr.msk.bf16.mxu1 %vm1963_vm0, %v1962_v1 }
  0xbb   : > { %1902 = vmatprep.mubr.msk.bf16.mxu0 %vm1963_vm0, %v1962_v1 }
  0xc1   : > { %1885 = vmatmul.mubr.msk.bf16.gmra.mrb[84].mxu1 %vm270_vm2, %v1233_v3 }
  0xc2   : > { %1903 = vmatmul.mubr.msk.bf16.gmra.mrb[84].mxu0 %vm270_vm2, %v1354_v2 }
  0xc3   : > { %1906 = vmatprep.mubr.msk.bf16.mxu0 %vm1963_vm0, %v1962_v1 }
  0xca   : > { %1907 = vmatmul.mubr.msk.bf16.gmra.mrb[88].mxu0 %vm270_vm2, %v1356_v5 }
  0xec   : > { %v344_v9 = vpop.f32.mrb[0].mxu1 }
  0xed   : > { %v320_v6 = vpop.f32.mrb[0].mxu0  ;;  %v1728_v12 = vpop.f32.mrb[1].mxu1 }
  0xee   : > { %v1716_v7 = vpop.f32.mrb[1].mxu0  ;;  %v347_v13 = vpop.f32.mrb[2].mxu1 }
  0xef   : > { %v323_v8 = vpop.f32.mrb[2].mxu0  ;;  %v1729_v10 = vpop.f32.mrb[3].mxu1 }
  0xf0   : > { %v1717_v11 = vpop.f32.mrb[3].mxu0 }
  0xf4   : > { %v352_v16 = vpop.f32.mrb[4].mxu1 }
  0xf5   : > { %v328_v14 = vpop.f32.mrb[4].mxu0  ;;  %v1732_v17 = vpop.f32.mrb[5].mxu1 }
  0xf6   : > { %v1720_v36 = vpop.f32.mrb[5].mxu0  ;;  %v355_v18 = vpop.f32.mrb[6].mxu1 }
  0xf7   : > { %v331_v15 = vpop.f32.mrb[6].mxu0  ;;  %v1733_v19 = vpop.f32.mrb[7].mxu1 }
  0xf8   : > { %v1721_v1 = vpop.f32.mrb[7].mxu0 }
  0xfc   : > { %v409_v22 = vpop.f32.mrb[8].mxu1 }
  0xfd   : > { %v336_v20 = vpop.f32.mrb[8].mxu0  ;;  %v410_v24 = vadd.f32 %v409_v22, %v320_v6  ;;  %v1738_v25 = vpop.f32.mrb[9].mxu1 }
  0xfe   : > { %v1724_v21 = vpop.f32.mrb[9].mxu0  ;;  %v412_v27 = vpop.f32.mrb[10].mxu1 }
  0xff   : > { %v339_v23 = vpop.f32.mrb[10].mxu0  ;;  %v413_v28 = vadd.f32 %v412_v27, %v323_v8  ;;  %v1739_v29 = vpop.f32.mrb[11].mxu1 }
 0x100   : > { %v1725_v26 = vpop.f32.mrb[11].mxu0 }
 0x104   : > { %v417_v33 = vpop.f32.mrb[12].mxu1 }
 0x105   : > { %v522_v30 = vpop.f32.mrb[12].mxu0  ;;  %v418_v35 = vadd.f32 %v417_v33, %v328_v14  ;;  %v1742_v37 = vpop.f32.mrb[13].mxu1 }
 0x106   : > { %v561_v31 = vadd.f32 %v522_v30, %v410_v24  ;;  %v1760_v32 = vpop.f32.mrb[13].mxu0  ;;  %v420_v40 = vpop.f32.mrb[14].mxu1 }
 0x107   : > { %v525_v34 = vpop.f32.mrb[14].mxu0  ;;  %v421_v42 = vadd.f32 %v420_v40, %v331_v15  ;;  %v1743_v44 = vpop.f32.mrb[15].mxu1 }
 0x108   : > { %v562_v38 = vadd.f32 %v525_v34, %v413_v28  ;;  %v1761_v39 = vpop.f32.mrb[15].mxu0 }
 0x10c   : > { %v425_v47 = vpop.f32.mrb[16].mxu1 }
 0x10d   : > { %v530_v45 = vpop.f32.mrb[16].mxu0  ;;  %v426_v49 = vadd.f32 %v425_v47, %v336_v20  ;;  %v1746_v50 = vpop.f32.mrb[17].mxu1 }
 0x10e   : > { %v563_v46 = vadd.f32 %v530_v45, %v418_v35  ;;  %v1764_v41 = vpop.f32.mrb[17].mxu0  ;;  %v428_v53 = vpop.f32.mrb[18].mxu1 }
 0x10f   : > { %v533_v48 = vpop.f32.mrb[18].mxu0  ;;  %v429_v54 = vadd.f32 %v428_v53, %v339_v23  ;;  %v1747_v55 = vpop.f32.mrb[19].mxu1 }
 0x110   : > { %v564_v51 = vadd.f32 %v533_v48, %v421_v42  ;;  %v1765_v52 = vpop.f32.mrb[19].mxu0 }
 0x114   : > { %v433_v43 = vpop.f32.mrb[20].mxu1 }
 0x115   : > { %v538_v56 = vpop.f32.mrb[20].mxu0  ;;  %v434_v60 = vadd.f32 %v433_v43, %v344_v9  ;;  %v1750_v61 = vpop.f32.mrb[21].mxu1 }
 0x116   : > { %v565_v57 = vadd.f32 %v538_v56, %v426_v49  ;;  %v1768_v58 = vpop.f32.mrb[21].mxu0  ;;  %v436_v0 = vpop.f32.mrb[22].mxu1 }
 0x117   : > { %v541_v59 = vpop.f32.mrb[22].mxu0  ;;  %v437_v2 = vadd.f32 %v436_v0, %v347_v13  ;;  %v1751_v3 = vpop.f32.mrb[23].mxu1 }
 0x118   : > { %v566_v62 = vadd.f32 %v541_v59, %v429_v54  ;;  %v1769_v63 = vpop.f32.mrb[23].mxu0 }
 0x11c   : > { %v441_v7 = vpop.f32.mrb[24].mxu1 }
 0x11d   : > { %v546_v4 = vpop.f32.mrb[24].mxu0  ;;  %v442_v11 = vadd.f32 %v441_v7, %v352_v16  ;;  %v1754_v12 = vpop.f32.mrb[25].mxu1 }
 0x11e   : > { %v567_v5 = vadd.f32 %v546_v4, %v434_v60  ;;  %v1772_v6 = vpop.f32.mrb[25].mxu0  ;;  %v444_v36 = vpop.f32.mrb[26].mxu1 }
 0x11f   : > { %v549_v8 = vpop.f32.mrb[26].mxu0  ;;  %v445_v15 = vadd.f32 %v444_v36, %v355_v18  ;;  %v1755_v1 = vpop.f32.mrb[27].mxu1 }
 0x120   : > { %v568_v10 = vadd.f32 %v549_v8, %v437_v2  ;;  %v1773_v14 = vpop.f32.mrb[27].mxu0 }
 0x124   : > { %v679_v20 = vpop.f32.mrb[28].mxu1 }
 0x125   : > { %v554_v17 = vpop.f32.mrb[28].mxu0  ;;  %v718_v22 = vadd.f32 %v679_v20, %v561_v31  ;;  %v1782_v13 = vpop.f32.mrb[29].mxu1 }
 0x126   : > { %v569_v9 = vadd.f32 %v554_v17, %v442_v11  ;;  %v1776_v19 = vpop.f32.mrb[29].mxu0  ;;  %v682_v25 = vpop.f32.mrb[30].mxu1 }
 0x127   : > { %v557_v21 = vpop.f32.mrb[30].mxu0  ;;  %v719_v26 = vadd.f32 %v682_v25, %v562_v38  ;;  %v1783_v27 = vpop.f32.mrb[31].mxu1 }
 0x128   : > { %v570_v23 = vadd.f32 %v557_v21, %v445_v15  ;;  %v1777_v24 = vpop.f32.mrb[31].mxu0 }
 0x12c   : > { %v687_v30 = vpop.f32.mrb[32].mxu1 }
 0x12d   : > { %v844_v28 = vpop.f32.mrb[32].mxu0  ;;  %v720_v33 = vadd.f32 %v687_v30, %v563_v46  ;;  %v1786_v18 = vpop.f32.mrb[33].mxu1 }
 0x12e   : > { %v883_v16 = vadd.f32 %v844_v28, %v718_v22  ;;  %v1804_v29 = vpop.f32.mrb[33].mxu0  ;;  %v690_v37 = vpop.f32.mrb[34].mxu1 }
 0x12f   : > { %v847_v32 = vpop.f32.mrb[34].mxu0  ;;  %v721_v39 = vadd.f32 %v690_v37, %v564_v51  ;;  %v1787_v40 = vpop.f32.mrb[35].mxu1 }
 0x130   : > { %v884_v34 = vadd.f32 %v847_v32, %v719_v26  ;;  %v1805_v35 = vpop.f32.mrb[35].mxu0 }
 0x134   : > { %v695_v45 = vpop.f32.mrb[36].mxu1 }
 0x135   : > { %v852_v42 = vpop.f32.mrb[36].mxu0  ;;  %v722_v47 = vadd.f32 %v695_v45, %v565_v57  ;;  %v1790_v38 = vpop.f32.mrb[37].mxu1 }
 0x136   : > { %v885_v31 = vadd.f32 %v852_v42, %v720_v33  ;;  %v1808_v44 = vpop.f32.mrb[37].mxu0  ;;  %v698_v50 = vpop.f32.mrb[38].mxu1 }
 0x137   : > { %v855_v41 = vpop.f32.mrb[38].mxu0  ;;  %v723_v52 = vadd.f32 %v698_v50, %v566_v62  ;;  %v1791_v53 = vpop.f32.mrb[39].mxu1 }
 0x138   : > { %v886_v48 = vadd.f32 %v855_v41, %v721_v39  ;;  %v1809_v49 = vpop.f32.mrb[39].mxu0 }
 0x13c   : > { %v703_v56 = vpop.f32.mrb[40].mxu1 }
 0x13d   : > { %v860_v54 = vpop.f32.mrb[40].mxu0  ;;  %v724_v43 = vadd.f32 %v703_v56, %v567_v5  ;;  %v1794_v51 = vpop.f32.mrb[41].mxu1 }
 0x13e   : > { %v887_v46 = vadd.f32 %v860_v54, %v722_v47  ;;  %v1812_v55 = vpop.f32.mrb[41].mxu0  ;;  %v706_v61 = vpop.f32.mrb[42].mxu1 }
 0x13f   : > { %v863_v58 = vpop.f32.mrb[42].mxu0  ;;  %v725_v63 = vadd.f32 %v706_v61, %v568_v10  ;;  %v1795_v0 = vpop.f32.mrb[43].mxu1 }
 0x140   : > { %v888_v59 = vadd.f32 %v863_v58, %v723_v52  ;;  %v1813_v60 = vpop.f32.mrb[43].mxu0 }
 0x144   : > { %v711_v4 = vpop.f32.mrb[44].mxu1 }
 0x145   : > { %v868_v2 = vpop.f32.mrb[44].mxu0  ;;  %v726_v7 = vadd.f32 %v711_v4, %v569_v9  ;;  %v1798_v62 = vpop.f32.mrb[45].mxu1 }
 0x146   : > { %v889_v57 = vadd.f32 %v868_v2, %v724_v43  ;;  %v1816_v3 = vpop.f32.mrb[45].mxu0  ;;  %v714_v12 = vpop.f32.mrb[46].mxu1 }
 0x147   : > { %v871_v6 = vpop.f32.mrb[46].mxu0  ;;  %v727_v14 = vadd.f32 %v714_v12, %v570_v23  ;;  %v1799_v36 = vpop.f32.mrb[47].mxu1 }
 0x148   : > { %v890_v8 = vadd.f32 %v871_v6, %v725_v63  ;;  %v1817_v11 = vpop.f32.mrb[47].mxu0 }
 0x14c   : > { %v967_v17 = vpop.f32.mrb[48].mxu1 }
 0x14d   : > { %v876_v15 = vpop.f32.mrb[48].mxu0  ;;  %v1006_v20 = vadd.f32 %v967_v17, %v883_v16  ;;  %v1826_v10 = vpop.f32.mrb[49].mxu1 }
 0x14e   : > { %v891_v5 = vadd.f32 %v876_v15, %v726_v7  ;;  %v1820_v1 = vpop.f32.mrb[49].mxu0  ;;  %v970_v13 = vpop.f32.mrb[50].mxu1 }
 0x14f   : > { %v879_v19 = vpop.f32.mrb[50].mxu0  ;;  %v1007_v24 = vadd.f32 %v970_v13, %v884_v34  ;;  %v1827_v25 = vpop.f32.mrb[51].mxu1  ;;  %v2350_v13 = vld [vmem:[%s2398_s2] ss:$0 sm:$0xff] }
 0x150   : > { %v892_v21 = vadd.f32 %v879_v19, %v727_v14  ;;  %v1821_v22 = vpop.f32.mrb[51].mxu0 }
 0x154   : > { %v975_v28 = vpop.f32.mrb[52].mxu1 }
 0x155   : > { %v1124_v26 = vpop.f32.mrb[52].mxu0  ;;  %v1008_v30 = vadd.f32 %v975_v28, %v885_v31  ;;  %v1830_v23 = vpop.f32.mrb[53].mxu1 }
 0x156   : > { %v1163_v9 = vadd.f32 %v1124_v26, %v1006_v20  ;;  %v1848_v27 = vpop.f32.mrb[53].mxu0  ;;  %v978_v18 = vpop.f32.mrb[54].mxu1 }
 0x157   : > { %v1127_v29 = vpop.f32.mrb[54].mxu0  ;;  %v1009_v35 = vadd.f32 %v978_v18, %v886_v48  ;;  %v1831_v37 = vpop.f32.mrb[55].mxu1 }
 0x158   : > { %v1164_v32 = vadd.f32 %v1127_v29, %v1007_v24  ;;  %v1849_v33 = vpop.f32.mrb[55].mxu0 }
 0x15c   : > { %v983_v42 = vpop.f32.mrb[56].mxu1 }
 0x15d   : > { %v1132_v39 = vpop.f32.mrb[56].mxu0  ;;  %v1010_v45 = vadd.f32 %v983_v42, %v887_v46  ;;  %v1834_v34 = vpop.f32.mrb[57].mxu1 }
 0x15e   : > { %v1165_v16 = vadd.f32 %v1132_v39, %v1008_v30  ;;  %v1852_v40 = vpop.f32.mrb[57].mxu0  ;;  %v986_v38 = vpop.f32.mrb[58].mxu1 }
 0x15f   : > { %v1135_v44 = vpop.f32.mrb[58].mxu0  ;;  %v1011_v49 = vadd.f32 %v986_v38, %v888_v59  ;;  %v1835_v50 = vpop.f32.mrb[59].mxu1 }
 0x160   : > { %v1166_v41 = vadd.f32 %v1135_v44, %v1009_v35  ;;  %v1853_v47 = vpop.f32.mrb[59].mxu0 }
 0x164   : > { %v991_v54 = vpop.f32.mrb[60].mxu1 }
 0x165   : > { %v1140_v52 = vpop.f32.mrb[60].mxu0  ;;  %v1012_v48 = vadd.f32 %v991_v54, %v889_v57  ;;  %v1838_v56 = vpop.f32.mrb[61].mxu1 }
 0x166   : > { %v2333_v31 = vadd.f32 %v1140_v52, %v1010_v45  ;;  %v1856_v53 = vpop.f32.mrb[61].mxu0  ;;  %v994_v51 = vpop.f32.mrb[62].mxu1 }
 0x167   : > { %v1143_v55 = vpop.f32.mrb[62].mxu0  ;;  %v1013_v46 = vadd.f32 %v994_v51, %v890_v8  ;;  %v1839_v60 = vpop.f32.mrb[63].mxu1 }
 0x168   : > { %v2335_v58 = vadd.f32 %v1143_v55, %v1011_v49  ;;  %v1857_v43 = vpop.f32.mrb[63].mxu0 }
 0x16c   : > { %v999_v0 = vpop.f32.mrb[64].mxu1 }
 0x16d   : > { %v1148_v61 = vpop.f32.mrb[64].mxu0  ;;  %v1014_v3 = vadd.f32 %v999_v0, %v891_v5  ;;  %v1842_v4 = vpop.f32.mrb[65].mxu1 }
 0x16e   : > { %v2337_v63 = vadd.f32 %v1148_v61, %v1012_v48  ;;  %v1860_v59 = vpop.f32.mrb[65].mxu0  ;;  %v1002_v57 = vpop.f32.mrb[66].mxu1 }
 0x16f   : > { %v1151_v2 = vpop.f32.mrb[66].mxu0  ;;  %v1015_v62 = vadd.f32 %v1002_v57, %v892_v21  ;;  %v1843_v11 = vpop.f32.mrb[67].mxu1 }
 0x170   : > { %v2339_v6 = vadd.f32 %v1151_v2, %v1013_v46  ;;  %v1861_v7 = vpop.f32.mrb[67].mxu0 }
 0x174   : > { %v1289_v36 = vpop.f32.mrb[68].mxu1 }
 0x175   : > { %v1156_v12 = vpop.f32.mrb[68].mxu0  ;;  %v1328_v1 = vadd.f32 %v1289_v36, %v1163_v9  ;;  %v1870_v17 = vpop.f32.mrb[69].mxu1 }
 0x176   : > { %v2343_v14 = vadd.f32 %v1156_v12, %v1014_v3  ;;  %v1864_v8 = vpop.f32.mrb[69].mxu0  ;;  %v1292_v20 = vpop.f32.mrb[70].mxu1 }
 0x177   : > { %v1159_v15 = vpop.f32.mrb[70].mxu0  ;;  %v1329_v10 = vadd.f32 %v1292_v20, %v1164_v32  ;;  %v1871_v22 = vpop.f32.mrb[71].mxu1 }
 0x178   : > { %v2345_v19 = vadd.f32 %v1159_v15, %v1015_v62  ;;  %v1865_v5 = vpop.f32.mrb[71].mxu0 }
 0x17c   : > { %v1297_v26 = vpop.f32.mrb[72].mxu1 }
 0x17d   : > { %v1412_v21 = vpop.f32.mrb[72].mxu0  ;;  %v1330_v9 = vadd.f32 %v1297_v26, %v1165_v16  ;;  %v1874_v29 = vpop.f32.mrb[73].mxu1 }
 0x17e   : > { %v1451_v24 = vadd.f32 %v1412_v21, %v1328_v1  ;;  %v1892_v25 = vpop.f32.mrb[73].mxu0  ;;  %v1300_v32 = vpop.f32.mrb[74].mxu1 }
 0x17f   : > { %v1415_v27 = vpop.f32.mrb[74].mxu0  ;;  %v1331_v18 = vadd.f32 %v1300_v32, %v1166_v41  ;;  %v1875_v37 = vpop.f32.mrb[75].mxu1 }
 0x180   : > { %v1468_v28 = vadd.f32 %v2350_v13, %v1451_v24  ;;  %v1452_v30 = vadd.f32 %v1415_v27, %v1329_v10  ;;  %v1893_v23 = vpop.f32.mrb[75].mxu0 }
 0x182   : > { %v1478_v33 = vmax.f32 %v1468_v28, 0.0  ;;  %v1469_v35 = vadd.f32 %v2350_v13, %v1452_v30 }
 0x184   : > { %1489 = vst.msk [vmem:[%s2356_s17] sm:$0xff] %vm1488_vm8, %v1478_v33  ;;  %v1479_v39 = vmax.f32 %v1469_v35, 0.0  ;;  %v1305_v44 = vpop.f32.mrb[76].mxu1 }
 0x185   : > { %v1420_v16 = vpop.f32.mrb[76].mxu0  ;;  %v1332_v34 = vadd.f32 %v1305_v44, %v2333_v31  ;;  %v1878_v41 = vpop.f32.mrb[77].mxu1 }
 0x186   : > { %1490 = vst.msk [vmem:[%s2356_s17 + $0x8] sm:$0xff] %vm1488_vm8, %v1479_v39  ;;  %v1453_v40 = vadd.f32 %v1420_v16, %v1330_v9  ;;  %v1896_v42 = vpop.f32.mrb[77].mxu0  ;;  %v1308_v50 = vpop.f32.mrb[78].mxu1 }
 0x187   : > { %v1423_v45 = vpop.f32.mrb[78].mxu0  ;;  %v1333_v53 = vadd.f32 %v1308_v50, %v2335_v58  ;;  %v1879_v55 = vpop.f32.mrb[79].mxu1 }
 0x188   : > { %v1470_v47 = vadd.f32 %v2350_v13, %v1453_v40  ;;  %v1454_v38 = vadd.f32 %v1423_v45, %v1331_v18  ;;  %v1897_v49 = vpop.f32.mrb[79].mxu0 }
 0x18a   : > { %v1480_v52 = vmax.f32 %v1470_v47, 0.0  ;;  %v1471_v54 = vadd.f32 %v2350_v13, %v1454_v38 }
 0x18c   : > { %1491 = vst.msk [vmem:[%s2356_s17 + $0x10] sm:$0xff] %vm1488_vm8, %v1480_v52  ;;  %v1481_v48 = vmax.f32 %v1471_v54, 0.0  ;;  %v1313_v51 = vpop.f32.mrb[80].mxu1 }
 0x18d   : > { %v1428_v56 = vpop.f32.mrb[80].mxu0  ;;  %v1334_v60 = vadd.f32 %v1313_v51, %v2337_v63  ;;  %v1882_v58 = vpop.f32.mrb[81].mxu1 }
 0x18e   : > { %1492 = vst.msk [vmem:[%s2356_s17 + $0x18] sm:$0xff] %vm1488_vm8, %v1481_v48  ;;  %v1455_v31 = vadd.f32 %v1428_v56, %v1332_v34  ;;  %v1900_v43 = vpop.f32.mrb[81].mxu0  ;;  %v1316_v2 = vpop.f32.mrb[82].mxu1 }
 0x18f   : > { %v1431_v46 = vpop.f32.mrb[82].mxu0  ;;  %v1335_v4 = vadd.f32 %v1316_v2, %v2339_v6  ;;  %v1883_v57 = vpop.f32.mrb[83].mxu1 }
 0x190   : > { %v1472_v61 = vadd.f32 %v2350_v13, %v1455_v31  ;;  %v1456_v59 = vadd.f32 %v1431_v46, %v1333_v53  ;;  %v1901_v0 = vpop.f32.mrb[83].mxu0 }
 0x192   : > { %v1482_v3 = vmax.f32 %v1472_v61, 0.0  ;;  %v1473_v7 = vadd.f32 %v2350_v13, %v1456_v59 }
 0x194   : > { %1493 = vst.msk [vmem:[%s2356_s17 + $0x20] sm:$0xff] %vm1488_vm8, %v1482_v3  ;;  %v1483_v62 = vmax.f32 %v1473_v7, 0.0  ;;  %v1321_v8 = vpop.f32.mrb[84].mxu1 }
 0x195   : > { %v1436_v11 = vpop.f32.mrb[84].mxu0  ;;  %v1336_v15 = vadd.f32 %v1321_v8, %v2343_v14  ;;  %v1886_v6 = vpop.f32.mrb[85].mxu1 }
 0x196   : > { %1494 = vst.msk [vmem:[%s2356_s17 + $0x28] sm:$0xff] %vm1488_vm8, %v1483_v62  ;;  %v1457_v63 = vadd.f32 %v1436_v11, %v1334_v60  ;;  %v1904_v12 = vpop.f32.mrb[85].mxu0  ;;  %v1324_v20 = vpop.f32.mrb[86].mxu1 }
 0x197   : > { %v1439_v36 = vpop.f32.mrb[86].mxu0  ;;  %v1337_v22 = vadd.f32 %v1324_v20, %v2345_v19  ;;  %v1887_v24 = vpop.f32.mrb[87].mxu1 }
 0x198   : > { %v1474_v1 = vadd.f32 %v2350_v13, %v1457_v63  ;;  %v1458_v17 = vadd.f32 %v1439_v36, %v1335_v4  ;;  %v1905_v5 = vpop.f32.mrb[87].mxu0 }
 0x19a   : > { %v1484_v10 = vmax.f32 %v1474_v1, 0.0  ;;  %v1475_v21 = vadd.f32 %v2350_v13, %v1458_v17 }
 0x19c   : > { %1495 = vst.msk [vmem:[%s2356_s17 + $0x30] sm:$0xff] %vm1488_vm8, %v1484_v10  ;;  %v1485_v25 = vmax.f32 %v1475_v21, 0.0 }
 0x19d   : > { %v1444_v26 = vpop.f32.mrb[88].mxu0 }
 0x19e   : > { %1496 = vst.msk [vmem:[%s2356_s17 + $0x38] sm:$0xff] %vm1488_vm8, %v1485_v25  ;;  %v1459_v14 = vadd.f32 %v1444_v26, %v1336_v15  ;;  %v1908_v27 = vpop.f32.mrb[89].mxu0 }
 0x19f   : > { %v1447_v9 = vpop.f32.mrb[90].mxu0 }
 0x1a0   : > { %v1476_v28 = vadd.f32 %v2350_v13, %v1459_v14  ;;  %v1460_v29 = vadd.f32 %v1447_v9, %v1337_v22  ;;  %v1909_v30 = vpop.f32.mrb[91].mxu0 }
 0x1a2   : > { %v1486_v23 = vmax.f32 %v1476_v28, 0.0  ;;  %v1477_v19 = vadd.f32 %v2350_v13, %v1460_v29 }
 0x1a4   : > { %1497 = vst.msk [vmem:[%s2356_s17 + $0x40] sm:$0xff] %vm1488_vm8, %v1486_v23  ;;  %v1487_v32 = vmax.f32 %v1477_v19, 0.0 }
 0x1a6   : > { %1498 = vst.msk [vmem:[%s2356_s17 + $0x48] sm:$0xff] %vm1488_vm8, %v1487_v32 }
 0x1a7 PF: > { %s13_s12 = sadd.s32 1, %s1960_s12  }
 0x1a8   : > { %p10_p5 = scmp.ge.s32.totalorder %s13_s12, 4  }
 0x1aa   :  { %12 = sbr.rel (!%p10_p5) target bundleno = 1 (0x1), region = 70 }

</bundles_post_ra>
